<compile_context>
chip_gen: v6e
topology: v6e:2x2x1
jax: 0.10.0
libtpu: 0.0.40
codegen_flags: <defaults>
</compile_context>

<pallas_src>
import math
import jax
import jax.numpy as jnp
from jax import lax
from jax.experimental import pallas as pl
from jax.experimental.pallas import tpu as pltpu

P_DROP = 0.1


def _sdp_dropout_kernel(q_ref, k_ref, v_ref, u_ref, o_ref):
    # q_ref/k_ref: (S, D); v_ref/u_ref/o_ref: (S, S)   (batch squeezed by BlockSpec)
    d = q_ref.shape[-1]
    scale = 1.0 / math.sqrt(d)

    # qk = q @ k^T, contraction expressed directly on the D axis (no transpose).
    qk = lax.dot_general(
        q_ref[...], k_ref[...],
        dimension_numbers=(((1,), (1,)), ((), ())),
        preferred_element_type=jnp.float32,
    )

    # Softmax along last axis with the 1/sqrt(d) scale folded into the exp arg.
    m = jnp.max(qk, axis=-1, keepdims=True)
    e = jnp.exp((qk - m) * scale)
    # Reciprocal of the row sum, with the dropout 1/(1-p) rescale fused in.
    # (approx=False kept for interpret-mode portability.)
    inv = pl.reciprocal(jnp.sum(e, axis=-1, keepdims=True), approx=False)
    inv = inv * (1.0 / (1.0 - P_DROP))

    # Dropout: keep with prob 1-p (u >= p), kept values already rescaled via inv.
    keep = u_ref[...] >= jnp.float32(P_DROP)
    dropped = jnp.where(keep, e * inv, 0.0)

    # TODO(synk): original PyTorch module references an undefined global `v`
    # (`output = dropout_qk * v`); we preserve the written semantics and treat
    # `v` as an explicit elementwise multiplicand of shape (B, S, S).
    o_ref[...] = (dropped * v_ref[...]).astype(o_ref.dtype)


def sdp_dropout(q, k, v, key):
    # q, k: (B, S, D); v: (B, S, S) -> out: (B, S, S)
    B, S, D = q.shape
    assert k.shape == (B, S, D) and v.shape == (B, S, S)

    # Dropout uniforms generated outside the kernel: per-call key => fresh mask
    # every invocation, and no TPU-only PRNG primitives inside the kernel.
    u = jax.random.uniform(key, (B, S, S), dtype=jnp.float32)

    return pl.pallas_call(
        _sdp_dropout_kernel,
        out_shape=jax.ShapeDtypeStruct((B, S, S), jnp.float32),
        grid=(B,),
        in_specs=[
            pl.BlockSpec((None, S, D), lambda b: (b, 0, 0)),
            pl.BlockSpec((None, S, D), lambda b: (b, 0, 0)),
            pl.BlockSpec((None, S, S), lambda b: (b, 0, 0)),
            pl.BlockSpec((None, S, S), lambda b: (b, 0, 0)),
        ],
        out_specs=pl.BlockSpec((None, S, S), lambda b: (b, 0, 0)),
        compiler_params=pltpu.CompilerParams(
            dimension_semantics=("parallel",)),
    )(q, k, v, u)


if __name__ == "__main__":
    key = jax.random.PRNGKey(0)
    k1, k2, k3, kdrop = jax.random.split(key, 4)

    B, S, D = 1, 16, 512  # shapes implied by the module's x1/x2
    x1 = jax.random.normal(k1, (B, S, D), dtype=jnp.float32)
    x2 = jax.random.normal(k2, (B, S, D), dtype=jnp.float32)
    v = jax.random.normal(k3, (B, S, S), dtype=jnp.float32)

    out = sdp_dropout(x1, x2, v, kdrop)
    jax.block_until_ready(out)

    assert out.shape == (B, S, S)
    assert jnp.all(jnp.isfinite(out))
    print("KERNEL_OK")
</pallas_src>

<mosaic_0001>
module attributes {stable_mosaic.version = 11 : i64} {
  func.func @_sdp_dropout_kernel(%arg0: i32, %arg1: memref<1x16x512xf32, #tpu.memory_space<vmem>>, %arg2: memref<1x16x512xf32, #tpu.memory_space<vmem>>, %arg3: memref<1x16x16xf32, #tpu.memory_space<vmem>>, %arg4: memref<1x16x16xf32, #tpu.memory_space<vmem>>, %arg5: memref<1x16x16xf32, #tpu.memory_space<vmem>>) attributes {dimension_semantics = [#tpu.dimension_semantics<parallel>], iteration_bounds = array<i64: 1>, scalar_prefetch = 0 : i64, scratch_operands = 0 : i64, tpu.core_type = #tpu.core_type<tc>, window_params = [{transform_indices = @transform_0, window_bounds = array<i64: 1, 16, 512>}, {transform_indices = @transform_1, window_bounds = array<i64: 1, 16, 512>}, {transform_indices = @transform_2, window_bounds = array<i64: 1, 16, 16>}, {transform_indices = @transform_3, window_bounds = array<i64: 1, 16, 16>}, {transform_indices = @transform_4, window_bounds = array<i64: 1, 16, 16>}]} {
    %c0 = arith.constant 0 : index
    %c0_0 = arith.constant 0 : index
    %c0_1 = arith.constant 0 : index
    %0 = vector.load %arg1[%c0, %c0_0, %c0_1] : memref<1x16x512xf32, #tpu.memory_space<vmem>>, vector<1x16x512xf32>
    %1 = vector.shape_cast %0 : vector<1x16x512xf32> to vector<16x512xf32>
    %c0_2 = arith.constant 0 : index
    %c0_3 = arith.constant 0 : index
    %c0_4 = arith.constant 0 : index
    %2 = vector.load %arg2[%c0_2, %c0_3, %c0_4] : memref<1x16x512xf32, #tpu.memory_space<vmem>>, vector<1x16x512xf32>
    %3 = vector.shape_cast %2 : vector<1x16x512xf32> to vector<16x512xf32>
    %cst = arith.constant dense<0.000000e+00> : vector<16x16xf32>
    %4 = tpu.matmul %1, %3, %cst {dimension_numbers = #tpu.dot_dimension_numbers<[1], [1], [0], [0], [0, 0, 1, 0], [], []>} : vector<16x512xf32>, vector<16x512xf32>, vector<16x16xf32> -> vector<16x16xf32>
    %cst_5 = arith.constant dense<0xFF800000> : vector<16xf32>
    %5 = vector.multi_reduction <maximumf>, %4, %cst_5 [1] : vector<16x16xf32> to vector<16xf32>
    %6 = vector.shape_cast %5 : vector<16xf32> to vector<16x1xf32>
    %7 = vector.broadcast %6 : vector<16x1xf32> to vector<16x16xf32>
    %8 = arith.subf %4, %7 : vector<16x16xf32>
    %cst_6 = arith.constant 0.0441941731 : f32
    %9 = vector.broadcast %cst_6 : f32 to vector<16x16xf32>
    %10 = arith.mulf %8, %9 : vector<16x16xf32>
    %11 = math.exp %10 : vector<16x16xf32>
    %cst_7 = arith.constant dense<0.000000e+00> : vector<16xf32>
    %12 = vector.multi_reduction <add>, %11, %cst_7 [1] : vector<16x16xf32> to vector<16xf32>
    %13 = vector.shape_cast %12 : vector<16xf32> to vector<16x1xf32>
    %14 = tpu.reciprocal %13 : vector<16x1xf32> -> vector<16x1xf32>
    %cst_8 = arith.constant 1.11111116 : f32
    %15 = vector.broadcast %cst_8 : f32 to vector<16x1xf32>
    %16 = arith.mulf %14, %15 : vector<16x1xf32>
    %c0_9 = arith.constant 0 : index
    %c0_10 = arith.constant 0 : index
    %c0_11 = arith.constant 0 : index
    %17 = vector.load %arg4[%c0_9, %c0_10, %c0_11] : memref<1x16x16xf32, #tpu.memory_space<vmem>>, vector<1x16x16xf32>
    %18 = vector.shape_cast %17 : vector<1x16x16xf32> to vector<16x16xf32>
    %cst_12 = arith.constant 1.000000e-01 : f32
    %19 = vector.broadcast %cst_12 : f32 to vector<16x16xf32>
    %20 = arith.cmpf oge, %18, %19 : vector<16x16xf32>
    %21 = vector.broadcast %16 : vector<16x1xf32> to vector<16x16xf32>
    %22 = arith.mulf %11, %21 : vector<16x16xf32>
    %cst_13 = arith.constant 0.000000e+00 : f32
    %23 = vector.broadcast %cst_13 : f32 to vector<16x16xf32>
    %24 = arith.select %20, %22, %23 : vector<16x16xi1>, vector<16x16xf32>
    %c0_14 = arith.constant 0 : index
    %c0_15 = arith.constant 0 : index
    %c0_16 = arith.constant 0 : index
    %25 = vector.load %arg3[%c0_14, %c0_15, %c0_16] : memref<1x16x16xf32, #tpu.memory_space<vmem>>, vector<1x16x16xf32>
    %26 = vector.shape_cast %25 : vector<1x16x16xf32> to vector<16x16xf32>
    %27 = arith.mulf %24, %26 : vector<16x16xf32>
    %c0_17 = arith.constant 0 : index
    %c0_18 = arith.constant 0 : index
    %c0_19 = arith.constant 0 : index
    %28 = vector.load %arg5[%c0_17, %c0_18, %c0_19] : memref<1x16x16xf32, #tpu.memory_space<vmem>>, vector<1x16x16xf32>
    %29 = vector.shape_cast %28 : vector<1x16x16xf32> to vector<16x16xf32>
    %30 = vector.shape_cast %27 : vector<16x16xf32> to vector<1x16x16xf32>
    tpu.vector_store %arg5[%c0_17, %c0_18, %c0_19], %30 {strides = array<i32>} : memref<1x16x16xf32, #tpu.memory_space<vmem>>, vector<1x16x16xf32>,
    return
  }
  func.func @transform_0(%arg0: i32) -> (i32, i32, i32) {
    %c0_i32 = arith.constant 0 : i32
    %c0_i32_0 = arith.constant 0 : i32
    %c0_i32_1 = arith.constant 0 : i32
    return %arg0, %c0_i32, %c0_i32_0 : i32, i32, i32
  }
  func.func @transform_1(%arg0: i32) -> (i32, i32, i32) {
    %c0_i32 = arith.constant 0 : i32
    %c0_i32_0 = arith.constant 0 : i32
    %c0_i32_1 = arith.constant 0 : i32
    return %arg0, %c0_i32, %c0_i32_0 : i32, i32, i32
  }
  func.func @transform_2(%arg0: i32) -> (i32, i32, i32) {
    %c0_i32 = arith.constant 0 : i32
    %c0_i32_0 = arith.constant 0 : i32
    %c0_i32_1 = arith.constant 0 : i32
    return %arg0, %c0_i32, %c0_i32_0 : i32, i32, i32
  }
  func.func @transform_3(%arg0: i32) -> (i32, i32, i32) {
    %c0_i32 = arith.constant 0 : i32
    %c0_i32_0 = arith.constant 0 : i32
    %c0_i32_1 = arith.constant 0 : i32
    return %arg0, %c0_i32, %c0_i32_0 : i32, i32, i32
  }
  func.func @transform_4(%arg0: i32) -> (i32, i32, i32) {
    %c0_i32 = arith.constant 0 : i32
    %c0_i32_0 = arith.constant 0 : i32
    %c0_i32_1 = arith.constant 0 : i32
    return %arg0, %c0_i32, %c0_i32_0 : i32, i32, i32
  }
}

</mosaic_0001>

<bundles_post_ra>
// kernel: tpu_custom_call.1
= control target key start
LH: loop header
LB: loop body
LE: loop exit
PB: predicated region body
PF: predicated region fallthrough
CT: control target
= control target key end

     0   :  { %9 = vsyncpa [#allocation3], 0  ;;  %s486_s0 = inlined_call_operand.hbm [shape: f32[1,16,512], index: 0, kind: input, shape index: {}]   ;;  %s487_s1 = inlined_call_operand.hbm [shape: f32[1,16,512], index: 1, kind: input, shape index: {}]   ;;  %s488_s2 = inlined_call_operand.hbm [shape: f32[1,16,16], index: 2, kind: input, shape index: {}]   ;;  %s489_s3 = inlined_call_operand.hbm [shape: f32[1,16,16], index: 3, kind: input, shape index: {}]   ;;  %s490_s4 = inlined_call_operand.hbm [shape: f32[1,16,16], index: 4, kind: output, shape index: {}]  }
   0x1   :  { %10 = vsyncpa [#allocation6], 0 }
   0x2   :  { %11 = vsyncpa [#allocation9], 0 }
   0x3   :  { %12 = vsyncpa [#allocation4], 0  ;;  %s422_s15 = smov [#allocation5]   ;;  %s423_s17 = smov [#allocation2]  }
   0x4   :  { %s30_s16 = sshll.u32 %s422_s15, 4  ;;  %s18_s18 = sshll.u32 %s423_s17, 4  ;;  %s31_s16 = int_to_ptr.vmem [resolvable:$true] %s30_s16  ;;  %s19_s18 = int_to_ptr.vmem [resolvable:$true] %s18_s18 }
   0x5   :  { %s322_s19 = scalar_lea.vmem %s31_s16, 1024  ;;  %p327_p1 = scmp.lt.s32.totalorder %s31_s16, %s31_s16 }
   0x6   :  { %p323_p0 = scmp.ne.s32.totalorder %s31_s16, %s322_s19  ;;  %p328_p2 = scmp.lt.s32.totalorder %s322_s19, %s322_s19 }
   0x8   :  { %p329_p3 = por %p328_p2, %p327_p1 }
   0xa   :  { %p330_p4 = pnand %p329_p3, %p323_p0 }
   0xc   :  { %333 = shalt.err (!%p330_p4)
}
   0xd   :  { %s424_s20 = smov 512   ;;  %s425_s21 = smov 32  }
   0xe   :  { %36 = dma.hbm_to_vmem [thread:$0]  %s487_s1, 1024, %s31_s16, [#allocation6], %s424_s20, %s424_s20, %s425_s21  }
   0xf   :  { %s342_s24 = scalar_lea.vmem %s19_s18, 1024  ;;  %p347_p6 = scmp.lt.s32.totalorder %s19_s18, %s19_s18 }
  0x10   :  { %p343_p5 = scmp.ne.s32.totalorder %s19_s18, %s342_s24  ;;  %p348_p7 = scmp.lt.s32.totalorder %s342_s24, %s342_s24 }
  0x12   :  { %p349_p8 = por %p348_p7, %p347_p6 }
  0x14   :  { %p350_p9 = pnand %p349_p8, %p343_p5 }
  0x16   :  { %353 = shalt.err (!%p350_p9)
}
  0x17   :  { %24 = dma.hbm_to_vmem [thread:$0]  %s486_s0, 1024, %s19_s18, [#allocation3], %s424_s20, %s424_s20, %s425_s21  }
  0x18   :  { %s426_s27 = smov [#allocation7]  }
  0x19   :  { %s42_s28 = sshll.u32 %s426_s27, 4  ;;  %s43_s28 = int_to_ptr.vmem [resolvable:$true] %s42_s28 }
  0x1a   :  { %s362_s29 = scalar_lea.vmem %s43_s28, 256  ;;  %p367_p11 = scmp.lt.s32.totalorder %s43_s28, %s43_s28 }
  0x1b   :  { %p363_p10 = scmp.ne.s32.totalorder %s43_s28, %s362_s29  ;;  %p368_p12 = scmp.lt.s32.totalorder %s362_s29, %s362_s29 }
  0x1d   :  { %p369_p13 = por %p368_p12, %p367_p11 }
  0x1f   :  { %p370_p0 = pnand %p369_p13, %p363_p10 }
  0x21   :  { %373 = shalt.err (!%p370_p0)
}
  0x22   :  { %s427_s1 = smov 128   ;;  %s428_s30 = smov 8  }
  0x23   :  { %48 = dma.hbm_to_vmem [thread:$0]  %s488_s2, 256, %s43_s28, [#allocation6], %s427_s1, %s427_s1, %s428_s30  }
  0x24   :  { %s429_s0 = smov [#allocation8]  }
  0x25   :  { %s54_s7 = sshll.u32 %s429_s0, 4  ;;  %s55_s7 = int_to_ptr.vmem [resolvable:$true] %s54_s7 }
  0x26   :  { %s382_s8 = scalar_lea.vmem %s55_s7, 256  ;;  %p387_p2 = scmp.lt.s32.totalorder %s55_s7, %s55_s7 }
  0x27   :  { %p383_p1 = scmp.ne.s32.totalorder %s55_s7, %s382_s8  ;;  %p388_p3 = scmp.lt.s32.totalorder %s382_s8, %s382_s8 }
  0x29   :  { %p389_p4 = por %p388_p3, %p387_p2 }
  0x2b   :  { %p390_p5 = pnand %p389_p4, %p383_p1 }
  0x2d   :  { %393 = shalt.err (!%p390_p5)
}
  0x2e   :  { %60 = dma.hbm_to_vmem [thread:$0]  %s489_s3, 256, %s55_s7, [#allocation9], %s427_s1, %s427_s1, %s428_s30  }
  0x2f   :  { %414 = dma.done.wait [#allocation3], 1024  }
  0x30   :  { %415 = vsyncadd [#allocation3], 4294966272 }
  0x31   :  { %416 = dma.done.wait [#allocation6], 1280  }
  0x32   :  { %417 = vsyncadd [#allocation6], 4294966016 }
  0x33   :  { %418 = dma.done.wait [#allocation9], 256  }
  0x34   :  { %419 = vsyncadd [#allocation9], 4294967040  ;;  %v86_v0 = vld [vmem:[#allocation5 + $0x28] sm:$0xff]  ;;  %v88_v1 = vld [vmem:[#allocation5 + $0x38] sm:$0xff]  ;;  %vm239_vm0 = vcmask 130048   ;;  %s430_s2 = smov [#allocation10]  }
  0x35   :  { %v85_v2 = vld [vmem:[#allocation5 + $0x20] sm:$0xff]  ;;  %117 = vmatprep.subr.mxu0 %v86_v0  ;;  %192 = vmatprep.subr.mxu1 %v88_v1  ;;  %v87_v3 = vld [vmem:[#allocation5 + $0x30] sm:$0xff]  ;;  %v82_v4 = vld [vmem:[#allocation5 + $0x8] sm:$0xff]  ;;  %s283_s3 = sshll.u32 %s430_s2, 4  ;;  %s284_s3 = int_to_ptr.vmem [resolvable:$true] %s283_s3 }
  0x36   :  { %v84_v5 = vld [vmem:[#allocation5 + $0x18] sm:$0xff]  ;;  %118 = vmatpush1.xpose.msra.mxu0 %v85_v2  ;;  %193 = vmatpush1.xpose.msra.mxu1 %v87_v3  ;;  %v74_v6 = vld [vmem:[#allocation2 + $0x8] sm:$0xff]  ;;  %v81_v7 = vld [vmem:[#allocation5] sm:$0xff]  ;;  %s394_s11 = scalar_lea.vmem %s284_s3, 256  ;;  %p399_p7 = scmp.lt.s32.totalorder %s284_s3, %s284_s3 }
  0x37   :  { %119 = vmatprep.subr.mxu0 %v82_v4  ;;  %194 = vmatprep.subr.mxu1 %v84_v5  ;;  %v83_v8 = vld [vmem:[#allocation5 + $0x10] sm:$0xff]  ;;  %v76_v9 = vld [vmem:[#allocation2 + $0x18] sm:$0xff]  ;;  %v73_v10 = vld [vmem:[#allocation2] sm:$0xff]  ;;  %p395_p6 = scmp.ne.s32.totalorder %s284_s3, %s394_s11  ;;  %p400_p8 = scmp.lt.s32.totalorder %s394_s11, %s394_s11 }
  0x38   :  { %153 = vmatprep.mubr.f32.mxu0 %v74_v6  ;;  %228 = vmatprep.mubr.f32.mxu1 %v76_v9  ;;  %v75_v11 = vld [vmem:[#allocation2 + $0x10] sm:$0xff]  ;;  %v78_v12 = vld [vmem:[#allocation2 + $0x28] sm:$0xff]  ;;  %v80_v13 = vld [vmem:[#allocation2 + $0x38] sm:$0xff] }
  0x39   :  { %v77_v14 = vld [vmem:[#allocation2 + $0x20] sm:$0xff]  ;;  %v79_v15 = vld [vmem:[#allocation2 + $0x30] sm:$0xff]  ;;  %v265_v46 = vld [vmem:[#allocation8 + $0x8] sm:$0xff]  ;;  %p401_p9 = por %p400_p8, %p399_p7 }
  0x3a   :  { %120 = vmatpush1.xpose.msra.mxu0 %v81_v7  ;;  %195 = vmatpush1.xpose.msra.mxu1 %v83_v8  ;;  %v264_v42 = vld [vmem:[#allocation8] sm:$0xff]  ;;  %v272_v47 = vld [vmem:[#allocation7] sm:$0xff]  ;;  %vm267_vm2 = vcmp.ge.f32.partialorder %v265_v46, 0.1  ;;  %v273_v53 = vld [vmem:[#allocation7 + $0x8] sm:$0xff] }
  0x3b   :  { %vm266_vm1 = vcmp.ge.f32.partialorder %v264_v42, 0.1  ;;  %p402_p10 = pnand %p401_p9, %p395_p6 }
  0x3d   :  { %154 = vmatmul.mubr.f32.vlgmr.msra.gmra.mxu0 %v73_v10  ;;  %229 = vmatmul.mubr.f32.vlgmr.msra.gmra.mxu1 %v75_v11 }
  0x3e   :  { %158 = vmatprep.mubr.f32.mxu0 %v78_v12  ;;  %233 = vmatprep.mubr.f32.mxu1 %v80_v13 }
  0x41   :  { %159 = vmatmul.mubr.f32.gmra.mxu0 %v77_v14  ;;  %234 = vmatmul.mubr.f32.gmra.mxu1 %v79_v15 }
  0xfd   :  { %v155_v16 = vpop.f32.mrf.mxu0  ;;  %v230_v17 = vpop.f32.mrf.mxu1 }
  0xfe   :  { %v231_v18 = vadd.f32 %v230_v17, %v155_v16 }
  0xff   :  { %v157_v19 = vpop.f32.mrf.mxu0  ;;  %v232_v20 = vpop.f32.mrf.mxu1 }
 0x100   :  { %v240_v21 = vsel %vm239_vm0, %v231_v18, -inf }
 0x101   :  { %v235_v22 = vpop.f32.mrf.mxu1  ;;  %241 = vmax.xlane.f32.xlu0 %v240_v21  ;;  %v160_v23 = vpop.f32.mrf.mxu0 }
 0x102   :  { %v236_v24 = vadd.f32 %v235_v22, %v160_v23 }
 0x103   :  { %v162_v25 = vpop.f32.mrf.mxu0  ;;  %v237_v26 = vpop.f32.mrf.mxu1 }
 0x104   :  { %v243_v27 = vsel %vm239_vm0, %v236_v24, -inf }
 0x105   :  { %244 = vmax.xlane.f32.xlu0 %v243_v27 }
 0x18a   :  { %v242_v28 = vpop.xlane.xlu0 %241 }
 0x18b   :  { %v246_v29 = vsub.f32 %v231_v18, %v242_v28 }
 0x18d   :  { %v248_v30 = vmul.f32 0.044194173, %v246_v29 }
 0x18e   :  { %v245_v31 = vpop.xlane.xlu0 %244 }
 0x18f   :  { %v250_v32 = vmul.f32 1.442695, %v248_v30  ;;  %v247_v33 = vsub.f32 %v236_v24, %v245_v31 }
 0x191   :  { %306 = vpow2.f32 %v250_v32  ;;  %v249_v34 = vmul.f32 0.044194173, %v247_v33 }
 0x193   :  { %v252_v35 = vmul.f32 1.442695, %v249_v34 }
 0x195   :  { %308 = vpow2.f32 %v252_v35 }
 0x19e   :  { %v307_v36 = vpop.eup %306 }
 0x19f   :  { %v254_v37 = vsel %vm239_vm0, %v307_v36, 0.0 }
 0x1a0   :  { %255 = vadd.xlane.f32.xlu1 %v254_v37 }
 0x1a2   :  { %v309_v38 = vpop.eup %308 }
 0x1a3   :  { %v257_v39 = vsel %vm239_vm0, %v309_v38, 0.0 }
 0x1a4   :  { %258 = vadd.xlane.f32.xlu1 %v257_v39 }
 0x229   :  { %v256_v40 = vpop.xlane.xlu1 %255 }
 0x22a   :  { %310 = vrcp.f32 %v256_v40 }
 0x22d   :  { %v259_v41 = vpop.xlane.xlu1 %258 }
 0x22e   :  { %312 = vrcp.f32 %v259_v41 }
 0x237   :  { %v311_v43 = vpop.eup %310 }
 0x238   :  { %v262_v44 = vmul.f32 1.1111112, %v311_v43 }
 0x23a   :  { %v268_v45 = vmul.f32 %v307_v36, %v262_v44 }
 0x23b   :  { %v313_v48 = vpop.eup %312 }
 0x23c   :  { %v270_v49 = vsel %vm266_vm1, %v268_v45, 0.0  ;;  %v263_v50 = vmul.f32 1.1111112, %v313_v48 }
 0x23d   :  { %v274_v51 = vmul.f32 %v272_v47, %v270_v49 }
 0x23e   :  { %v269_v52 = vmul.f32 %v309_v38, %v263_v50 }
 0x23f   :  { %276 = vst.msk [vmem:[#allocation10] sm:$0xff] %vm239_vm0, %v274_v51 }
 0x240   :  { %v271_v54 = vsel %vm267_vm2, %v269_v52, 0.0 }
 0x241   :  { %v275_v55 = vmul.f32 %v273_v53, %v271_v54 }
 0x243   :  { %277 = vst.msk [vmem:[#allocation10 + $0x8] sm:$0xff] %vm239_vm0, %v275_v55 }
 0x244   :  { %405 = shalt.err (!%p402_p10)
}
 0x245   :  { %289 = dma.vmem_to_hbm [thread:$0]  %s284_s3, 256, %s490_s4, [#allocation4], %s427_s1, %s427_s1, %s428_s30  }
 0x246   :  { %420 = dma.done.wait [#allocation4], 256  }
 0x247   :  { %421 = vsyncadd [#allocation4], 4294967040 }
 0x248   :  { %293 = vsyncpa [#allocation3], 1 }
 0x249   :  { %294 = vsyncpa [#allocation6], 1 }
 0x24a   :  { %295 = vsyncpa [#allocation9], 1 }
 0x24b   :  { %296 = vsyncpa [#allocation4], 1 }

</bundles_post_ra>
